<compile_context>
chip_gen: v7x
topology: tpu7x:2x2x1
jax: 0.10.0
libtpu: 0.0.40
codegen_flags: <defaults>
</compile_context>

<pallas_src>
import functools

import jax
import jax.numpy as jnp
from jax import lax
from jax.experimental import pallas as pl
from jax.experimental.pallas import tpu as pltpu


def make_angle(embed_dim: int, num_heads: int) -> jnp.ndarray:
    """Deterministic buffer init, mirroring RoPE.__init__."""
    n = embed_dim // num_heads // 4
    base = 1.0 / (10000.0 ** jnp.linspace(0.0, 1.0, n))          # (n,)
    # unsqueeze(-1).repeat(1, 2).flatten() == element-wise interleaved repeat
    return jnp.repeat(base, 2).astype(jnp.float32)               # (2n,) == (Da,)


def _rope_kernel(angle_h_ref, sin_w_ref, cos_w_ref, sin_ref, cos_ref, *,
                 block_h):
    """One grid step: rows [i*block_h, i*block_h + block_h) of the flattened
    (H, W*D) sin / cos tables, written lane-dense."""
    th, wd = sin_ref.shape                                       # (block_h, W*D)

    # Absolute row index for every element of the block (int iota -> f32).
    rows = (pl.program_id(0) * block_h
            + lax.broadcasted_iota(jnp.int32, (th, wd), 0)).astype(jnp.float32)

    # Height phase at full lane width; angle_h is 0 on the width lanes.
    ph_h = rows * angle_h_ref[...]                               # (TH, W*D)

    # sin: sin(0) == 0 on width lanes, so a single add fuses the two halves.
    sin_ref[...] = (jnp.sin(ph_h) + sin_w_ref[...]).astype(sin_ref.dtype)

    # cos: cos(0) == 1 on width lanes; cos_w_ref stores (cos(w*angle) - 1)
    # there, so a single add yields cos(w*angle) with no mask multiply.
    cos_ref[...] = (jnp.cos(ph_h) + cos_w_ref[...]).astype(cos_ref.dtype)


def _pick_block_h(h: int, wd: int) -> int:
    """Rows per grid block.

    * Cap each output block at ~2 MiB (>= the measured roofline knee) so
      2 outputs x 2 pipeline buffers + the in-kernel f32 temporaries stay far
      below v7x's 32 MiB scoped-VMEM default (64 MiB physical).
    * When H >= 16, force >= 2 balanced blocks so the parallel grid axis feeds
      both TensorCores on v7x.
    """
    if h < 16:
        return h                                                 # single full block
    cap_rows = max(8, ((2 * 1024 * 1024) // (4 * wd)) // 8 * 8)
    half = -(-h // 2)                                            # cdiv(h, 2)
    target = ((half + 7) // 8) * 8                               # round up to 8
    return max(8, min(h, target, cap_rows))


def rope_pallas(angle: jnp.ndarray, slen, block_h: int | None = None,
                out_dtype=jnp.float32):
    """Returns (sin, cos), each of shape (h, w, 2 * angle.shape[0])."""
    h, w = int(slen[0]), int(slen[1])
    da = int(angle.shape[0])
    d = 2 * da
    wd = w * d

    if block_h is None:
        block_h = _pick_block_h(h, wd)
    block_h = min(block_h, h)
    if block_h < h:                                              # keep (8,128) tiling rule
        block_h = max(8, (block_h // 8) * 8)
    grid = (pl.cdiv(h, block_h),)

    # ---- host-side tiny constants (pure functions of angle / W) -----------
    angle32 = angle.astype(jnp.float32)
    zeros_da = jnp.zeros((da,), jnp.float32)
    # Height-angle row: angle on the first Da lanes of every D-block, 0 after.
    angle_h_row = jnp.tile(jnp.concatenate([angle32, zeros_da]), (w,)).reshape(1, wd)
    # Width rows, masked to the width lanes (height lanes are 0).
    iw = jnp.arange(w, dtype=jnp.float32)[:, None]                           # (W, 1)
    sin_w = jnp.sin(iw * angle32[None, :])                                   # (W, Da)
    cos_w_m1 = jnp.cos(iw * angle32[None, :]) - 1.0                          # (W, Da)
    zeros_wd = jnp.zeros((w, da), jnp.float32)
    sin_w_row = jnp.concatenate([zeros_wd, sin_w], axis=1).reshape(1, wd)
    cos_w_row = jnp.concatenate([zeros_wd, cos_w_m1], axis=1).reshape(1, wd)

    kernel = functools.partial(_rope_kernel, block_h=block_h)

    row_spec = pl.BlockSpec((1, wd), lambda i: (0, 0))
    out_spec = pl.BlockSpec((block_h, wd), lambda i: (i, 0))

    sin_flat, cos_flat = pl.pallas_call(
        kernel,
        out_shape=(jax.ShapeDtypeStruct((h, wd), out_dtype),
                   jax.ShapeDtypeStruct((h, wd), out_dtype)),
        grid=grid,
        in_specs=[row_spec, row_spec, row_spec],
        out_specs=(out_spec, out_spec),
        compiler_params=pltpu.CompilerParams(
            dimension_semantics=("parallel",)),
    )(angle_h_row, sin_w_row, cos_w_row)

    # Free metadata reshape back to the module's (H, W, D) layout.
    return sin_flat.reshape(h, w, d), cos_flat.reshape(h, w, d)


def rope_reference(angle: jnp.ndarray, slen):
    """Pure-JAX reference for correctness checking (mirrors RoPE.forward)."""
    h, w = int(slen[0]), int(slen[1])
    ih = jnp.arange(h, dtype=jnp.float32)
    iw = jnp.arange(w, dtype=jnp.float32)
    sin_h = jnp.sin(ih[:, None] * angle[None, :])
    sin_w = jnp.sin(iw[:, None] * angle[None, :])
    cos_h = jnp.cos(ih[:, None] * angle[None, :])
    cos_w = jnp.cos(iw[:, None] * angle[None, :])
    da = angle.shape[0]
    sin = jnp.concatenate(
        [jnp.broadcast_to(sin_h[:, None, :], (h, w, da)),
         jnp.broadcast_to(sin_w[None, :, :], (h, w, da))], axis=-1)
    cos = jnp.concatenate(
        [jnp.broadcast_to(cos_h[:, None, :], (h, w, da)),
         jnp.broadcast_to(cos_w[None, :, :], (h, w, da))], axis=-1)
    return sin, cos


if __name__ == "__main__":
    # RoPE.forward takes no tensor inputs (only slen); key kept for the
    # deterministic-setup convention.
    _ = jax.random.PRNGKey(0)

    embed_dim, num_heads = 64, 2          # head_dim = 32 -> angle length 16 -> D = 32
    slen = (16, 16)                       # H = W = 16, flattened lane width W*D = 512

    angle = make_angle(embed_dim, num_heads)
    sin_ref, cos_ref = rope_reference(angle, slen)

    # Default path (f32 output, matches the PyTorch module exactly).
    sin, cos = rope_pallas(angle, slen)   # auto block_h -> 2 blocks of 8 rows
    jax.block_until_ready((sin, cos))
    assert sin.shape == (slen[0], slen[1], embed_dim // num_heads)
    assert cos.shape == (slen[0], slen[1], embed_dim // num_heads)
    assert jnp.allclose(sin, sin_ref, atol=1e-5), "sin mismatch (f32)"
    assert jnp.allclose(cos, cos_ref, atol=1e-5), "cos mismatch (f32)"

    # bf16 output path (half the HBM store bytes; f32 math in-kernel).
    sin_bf, cos_bf = rope_pallas(angle, slen, out_dtype=jnp.bfloat16)
    jax.block_until_ready((sin_bf, cos_bf))
    assert sin_bf.dtype == jnp.bfloat16 and cos_bf.dtype == jnp.bfloat16
    assert jnp.allclose(sin_bf.astype(jnp.float32), sin_ref, atol=8e-3), "sin mismatch (bf16)"
    assert jnp.allclose(cos_bf.astype(jnp.float32), cos_ref, atol=8e-3), "cos mismatch (bf16)"

    print("KERNEL_OK")
</pallas_src>

<mosaic_0001>
module attributes {stable_mosaic.version = 11 : i64} {
  func.func @_rope_kernel(%arg0: i32, %arg1: memref<1x512xf32, #tpu.memory_space<vmem>>, %arg2: memref<1x512xf32, #tpu.memory_space<vmem>>, %arg3: memref<1x512xf32, #tpu.memory_space<vmem>>, %arg4: memref<8x512xf32, #tpu.memory_space<vmem>>, %arg5: memref<8x512xf32, #tpu.memory_space<vmem>>) attributes {dimension_semantics = [#tpu.dimension_semantics<parallel>], iteration_bounds = array<i64: 2>, scalar_prefetch = 0 : i64, scratch_operands = 0 : i64, tpu.core_type = #tpu.core_type<tc>, window_params = [{pipeline_mode = #tpu.pipeline_mode<synchronous>, transform_indices = @transform_0, window_bounds = array<i64: 1, 512>}, {pipeline_mode = #tpu.pipeline_mode<synchronous>, transform_indices = @transform_1, window_bounds = array<i64: 1, 512>}, {pipeline_mode = #tpu.pipeline_mode<synchronous>, transform_indices = @transform_2, window_bounds = array<i64: 1, 512>}, {transform_indices = @transform_3, window_bounds = array<i64: 8, 512>}, {transform_indices = @transform_4, window_bounds = array<i64: 8, 512>}]} {
    %c8_i32 = arith.constant 8 : i32
    %0 = arith.muli %arg0, %c8_i32 : i32
    %1 = tpu.iota {dimensions = array<i32: 0>} : vector<8x512xi32>
    %2 = vector.broadcast %0 : i32 to vector<8x512xi32>
    %3 = arith.addi %2, %1 : vector<8x512xi32>
    %4 = arith.sitofp %3 : vector<8x512xi32> to vector<8x512xf32>
    %c0 = arith.constant 0 : index
    %c0_0 = arith.constant 0 : index
    %5 = vector.load %arg1[%c0, %c0_0] : memref<1x512xf32, #tpu.memory_space<vmem>>, vector<1x512xf32>
    %6 = vector.broadcast %5 : vector<1x512xf32> to vector<8x512xf32>
    %7 = arith.mulf %4, %6 : vector<8x512xf32>
    %8 = math.sin %7 : vector<8x512xf32>
    %c0_1 = arith.constant 0 : index
    %c0_2 = arith.constant 0 : index
    %9 = vector.load %arg2[%c0_1, %c0_2] : memref<1x512xf32, #tpu.memory_space<vmem>>, vector<1x512xf32>
    %10 = vector.broadcast %9 : vector<1x512xf32> to vector<8x512xf32>
    %11 = arith.addf %8, %10 : vector<8x512xf32>
    %c0_3 = arith.constant 0 : index
    %c0_4 = arith.constant 0 : index
    %12 = vector.load %arg4[%c0_3, %c0_4] : memref<8x512xf32, #tpu.memory_space<vmem>>, vector<8x512xf32>
    tpu.vector_store %arg4[%c0_3, %c0_4], %11 {strides = array<i32>} : memref<8x512xf32, #tpu.memory_space<vmem>>, vector<8x512xf32>,
    %13 = math.cos %7 : vector<8x512xf32>
    %c0_5 = arith.constant 0 : index
    %c0_6 = arith.constant 0 : index
    %14 = vector.load %arg3[%c0_5, %c0_6] : memref<1x512xf32, #tpu.memory_space<vmem>>, vector<1x512xf32>
    %15 = vector.broadcast %14 : vector<1x512xf32> to vector<8x512xf32>
    %16 = arith.addf %13, %15 : vector<8x512xf32>
    %c0_7 = arith.constant 0 : index
    %c0_8 = arith.constant 0 : index
    %17 = vector.load %arg5[%c0_7, %c0_8] : memref<8x512xf32, #tpu.memory_space<vmem>>, vector<8x512xf32>
    tpu.vector_store %arg5[%c0_7, %c0_8], %16 {strides = array<i32>} : memref<8x512xf32, #tpu.memory_space<vmem>>, vector<8x512xf32>,
    return
  }
  func.func @transform_0(%arg0: i32) -> (i32, i32) {
    %c0_i32 = arith.constant 0 : i32
    %c0_i32_0 = arith.constant 0 : i32
    %c0_i32_1 = arith.constant 0 : i32
    return %c0_i32, %c0_i32_0 : i32, i32
  }
  func.func @transform_1(%arg0: i32) -> (i32, i32) {
    %c0_i32 = arith.constant 0 : i32
    %c0_i32_0 = arith.constant 0 : i32
    %c0_i32_1 = arith.constant 0 : i32
    return %c0_i32, %c0_i32_0 : i32, i32
  }
  func.func @transform_2(%arg0: i32) -> (i32, i32) {
    %c0_i32 = arith.constant 0 : i32
    %c0_i32_0 = arith.constant 0 : i32
    %c0_i32_1 = arith.constant 0 : i32
    return %c0_i32, %c0_i32_0 : i32, i32
  }
  func.func @transform_3(%arg0: i32) -> (i32, i32) {
    %c0_i32 = arith.constant 0 : i32
    %c0_i32_0 = arith.constant 0 : i32
    return %arg0, %c0_i32 : i32, i32
  }
  func.func @transform_4(%arg0: i32) -> (i32, i32) {
    %c0_i32 = arith.constant 0 : i32
    %c0_i32_0 = arith.constant 0 : i32
    return %arg0, %c0_i32 : i32, i32
  }
}

</mosaic_0001>

<bundles_post_ra>
// kernel: tpu_custom_call.1
= control target key start
LH: loop header
LB: loop body
LE: loop exit
PB: predicated region body
PF: predicated region fallthrough
CT: control target
= control target key end

     0   :  { %10 = vsyncpa [#allocation3], 0  ;;  %s2228_s0 = inlined_call_operand.hbm [shape: f32[1,512], index: 0, kind: input, shape index: {}]   ;;  %s2229_s1 = inlined_call_operand.hbm [shape: f32[1,512], index: 1, kind: input, shape index: {}]   ;;  %s2230_s2 = inlined_call_operand.vmem [shape: f32[1,512], index: 2, kind: input, shape index: {}]   ;;  %s2231_s3 = inlined_call_operand.hbm [shape: f32[16,512], index: 3, kind: output, shape index: {0}]   ;;  %s2232_s4 = inlined_call_operand.hbm [shape: f32[16,512], index: 4, kind: output, shape index: {1}]  }
   0x1   :  { %11 = vsyncpa [#allocation6], 0 }
   0x2   :  { %12 = vsyncpa [#allocation4], 0 }
   0x3   :  { %14 = vsyncpa [#allocation4 + $0x1], 0 }
   0x4   :  { %15 = vsyncpa [#allocation9], 0 }
   0x5   :  { %17 = vsyncpa [#allocation9 + $0x1], 0  ;;  %s1618_s15 = smov 0   ;;  %s1620_s16 = smov 0  }
   0x6   :  { %s1622_s17 = smov 0   ;;  %s1624_s18 = smov 0  }
   0x7 LB: > { %s1639_s19 = sadd.s32 4294967295, %s1581_s18   ;;  %s1268_s20 = sadd.s32 4294967294, %s1581_s18   ;;  %s1581_s18 = sphi %s1624_s18, %s2254_s18   ;;  %s1577_s17 = sphi %s1622_s17, %s2253_s17   ;;  %s1573_s16 = sphi %s1620_s16, %s2252_s16   ;;  %s1569_s15 = sphi %s1618_s15, %s2251_s15  }
   0x8   : > { %s1643_s21 = sadd.s32 1, %s1581_s18   ;;  %s93_s22 = sadd.s32 1, %s1577_s17 }
   0x9   : > { %s90_s23 = ssub.s32 %s1581_s18, %s1643_s21  ;;  %p103_p0 = scmp.ne.s32.totalorder %s1577_s17, %s1573_s16 }
   0xa   : > { %p91_p1 = scmp.eq.s32.totalorder %s90_s23, 0  ;;  %p104_p2 = scmp.eq.s32.totalorder %s1639_s19, 1 }
   0xb   : > { %p109_p3 = scmp.ne.s32.totalorder %s1573_s16, %s1569_s15  ;;  %p110_p4 = scmp.eq.s32.totalorder %s1268_s20, 1 }
   0xc   : > { %s1654_s24 = scalar_select %p91_p1, %s1577_s17, %s93_s22  }
   0xd   : > { %p1656_p5 = por %p104_p2, %p103_p0  ;;  %p1660_p6 = por %p110_p4, %p109_p3 }
   0xe   : > { %p1269_p7 = scmp.ge.s32.totalorder %s1581_s18, 1  ;;  %p143_p8 = scmp.lt.s32.totalorder %s1581_s18, 3 }
   0xf   : > { %s2236_s25 = scalar_select %p1656_p5, 1, 0 }
  0x10   : > { %s2237_s26 = scalar_select %p1660_p6, 1, 0 }
  0x11   : > { %p2233_p9 = scmp.eq.s32.totalorder %s1639_s19, 0  ;;  %p1667_p10 = pnand %p1269_p7, %p143_p8 }
  0x12   : > { %s1583_s28 = smov [#allocation2]   ;;  %s1584_s30 = smov [#allocation5]  }
  0x13   : > { %s2238_s27 = scalar_select %p1667_p10, 1, 0 }
  0x14   : > { %s156_s29 = sshll.u32 %s1583_s28, 4  ;;  %p1348_p11 = pneg %p1667_p10  ;;  %s157_s29 = int_to_ptr.vmem [resolvable:$true] %s156_s29 }
  0x15   : > { %s167_s5 = sshll.u32 %s1584_s30, 4  ;;  %s1423_s9 = scalar_lea.hbm %s2228_s0, 64  ;;  %s1679_s5 = int_to_ptr.vmem [resolvable:$true] %s167_s5 }
  0x16   : > { %p1675_p12 = pnand %p2233_p9, %p1348_p11  ;;  %p1424_p13 = scmp.ne.s32.totalorder %s2228_s0, %s1423_s9 }
  0x17   : > { %p1430_p3 = scmp.lt.u32.totalorder %s1423_s9, %s2228_s0 }
  0x18   : > { %p1425_p0 = pneg %p1675_p12 }
  0x1a   : > { %p1426_p1 = pnand %p1425_p0, %p1424_p13 }
  0x1c   : > { %p1427_p2 = pneg %p1426_p1 }
  0x1e   : > { %p1432_p4 = pnand %p1430_p3, %p1427_p2 }
  0x20   : > { %1435 = shalt.err (!%p1432_p4)
}
  0x21   : > { %s1436_s14 = scalar_lea.vmem %s157_s29, 64  ;;  %p1444_p9 = scmp.lt.s32.totalorder %s157_s29, %s157_s29 }
  0x22   : > { %p1437_p7 = scmp.ne.s32.totalorder %s157_s29, %s1436_s14  ;;  %p1445_p6 = scmp.lt.s32.totalorder %s1436_s14, %s1436_s14 }
  0x24   : > { %p1439_p8 = pnand %p1437_p7, %p1425_p0  ;;  %p1446_p5 = por %p1445_p6, %p1444_p9 }
  0x26   : > { %p1440_p11 = pneg %p1439_p8 }
  0x28   : > { %p1447_p10 = pnand %p1446_p5, %p1440_p11 }
  0x2a   : > { %1450 = shalt.err (!%p1447_p10)
}
  0x2b   : > { %1351 = dma.hbm_to_vmem [thread:$0]  (!%p1675_p12), %s2228_s0, 64, %s157_s29, [#allocation3]  }
  0x2c   : > { %s1451_s30 = scalar_lea.hbm %s2229_s1, 64 }
  0x2d   : > { %p1452_p13 = scmp.ne.s32.totalorder %s2229_s1, %s1451_s30  ;;  %p1458_p9 = scmp.lt.u32.totalorder %s1451_s30, %s2229_s1 }
  0x2f   : > { %p1454_p6 = pnand %p1452_p13, %p1425_p0 }
  0x31   : > { %p1455_p5 = pneg %p1454_p6 }
  0x33   : > { %p1460_p10 = pnand %p1458_p9, %p1455_p5 }
  0x35   : > { %1463 = shalt.err (!%p1460_p10)
}
  0x36   : > { %s1464_s29 = scalar_lea.vmem %s1679_s5, 64  ;;  %p1472_p4 = scmp.lt.s32.totalorder %s1679_s5, %s1679_s5 }
  0x37   : > { %p1465_p1 = scmp.ne.s32.totalorder %s1679_s5, %s1464_s29  ;;  %p1473_p7 = scmp.lt.s32.totalorder %s1464_s29, %s1464_s29 }
  0x39   : > { %p1467_p2 = pnand %p1465_p1, %p1425_p0  ;;  %p1474_p8 = por %p1473_p7, %p1472_p4 }
  0x3b   : > { %p1468_p3 = pneg %p1467_p2 }
  0x3d   : > { %p1475_p11 = pnand %p1474_p8, %p1468_p3 }
  0x3f   : > { %1478 = shalt.err (!%p1475_p11)
}
  0x40   : > { %1354 = dma.hbm_to_vmem [thread:$0]  (!%p1675_p12), %s2229_s1, 64, %s1679_s5, [#allocation6]  }
  0x41   : > { %p2240_p13 = scmp.ne.s32.totalorder %s2238_s27, 0 }
  0x42   : > { %p2241_p6 = scmp.eq.s32.totalorder (!%p2240_p13), %s1639_s19, 0 }
  0x43   : > { %183 = sbr.rel (%p2240_p13) target bundleno = 265 (0x109), region = 32 }
  0x4a   : > { %1552 = dma.done.wait (%p2241_p6), [#allocation3], 64   ;;  %p2242_p0 = pmov %p2241_p6 }
  0x4c   : > { %1554 = vsyncadd (%p2242_p0), [#allocation3], 4294967232  ;;  %p2243_p5 = pmov %p2242_p0 }
  0x4d   : > { %p2244_p9 = pmov %p2242_p0 }
  0x4e   : > { %1556 = dma.done.wait (%p2243_p5), [#allocation6], 64  }
  0x4f   : > { %1558 = vsyncadd (%p2244_p9), [#allocation6], 4294967232  ;;  %s1277_s6 = sshll.u32 %s1639_s19, 3  ;;  %v214_v0 = vlaneseq  ;;  %v219_v8 = vld [vmem:[#allocation2] sm:$0xf]  ;;  %s2032_s27 = sand.u32 1, %s1573_s16  }
  0x50   : > { %v216_v1 = vstv %s1277_s6  ;;  %v1585_v46 = vmov 683565275   ;;  %v1586_v48 = vmov 2475754826   ;;  %v1587_v50 = vmov 2131351028  }
  0x51   : > { %v215_v2 = vshrl.u32 %v214_v0, 7  ;;  %v1588_v52 = vmov 2102212464   ;;  %v1589_v54 = vmov 920167782   ;;  %s1275_s5 = sshll.u32 %s2032_s27, 5 }
  0x52   : > { %v1590_v62 = vmov 1326507024   ;;  %s2080_s20 = scalar_lea.vmem [#allocation7], %s1275_s5  ;;  %s2101_s22 = scalar_lea.vmem [#allocation8], %s1275_s5 }
  0x53   : > { %v217_v3 = vadd.s32 %v216_v1, %v215_v2  ;;  %v1739_v4 = vsub.s32 0, %v215_v2  ;;  %v1741_v5 = vsub.s32 1, %v215_v2  ;;  %v1743_v6 = vsub.s32 2, %v215_v2  ;;  %s1153_s23 = sshll.u32 %s2080_s20, 4  ;;  %s1318_s28 = sshll.u32 %s1639_s19, 9  ;;  %s2151_s23 = int_to_ptr.vmem [resolvable:$true] %s1153_s23 }
  0x54   : > { %v1758_v19 = vsub.s32 3, %v215_v2  ;;  %s1167_s30 = sshll.u32 %s2101_s22, 4  ;;  %s2156_s19 = scalar_lea.hbm %s2231_s3, %s1318_s28  ;;  %s2158_s30 = int_to_ptr.vmem [resolvable:$true] %s1167_s30 }
  0x55   : > { %v218_v7 = vcvt.s32.f32 %v217_v3  ;;  %v224_v9 = vrot.slane %v219_v8, %v1739_v4  ;;  %v228_v10 = vrot.slane %v219_v8, %v1741_v5  ;;  %v232_v11 = vrot.slane %v219_v8, %v1743_v6  ;;  %s2163_s29 = scalar_lea.hbm %s2232_s4, %s1318_s28  ;;  %s1134_s11 = scalar_lea.sflag [#allocation4], %s2032_s27 }
  0x56   : > { %v236_v28 = vrot.slane %v219_v8, %v1758_v19  ;;  %s1479_s12 = scalar_lea.vmem %s2151_s23, 512  ;;  %p2249_p10 = scmp.ne.s32.totalorder %s2236_s25, 0 }
  0x57   : > { %v1748_v12 = vmul.f32 %v224_v9, %v218_v7  ;;  %v1750_v13 = vmul.f32 %v228_v10, %v218_v7  ;;  %v1752_v14 = vmul.f32 %v232_v11, %v218_v7  ;;  %p1480_p12 = scmp.ne.s32.totalorder %s2151_s23, %s1479_s12  ;;  %s1591_s6 = smov [#allocation7]  }
  0x58   : > { %v1767_v36 = vmul.f32 %v236_v28, %v218_v7  ;;  %s1483_s5 = sshll.u32 %s1591_s6, 4  ;;  %s1484_s5 = int_to_ptr.vmem [resolvable:$false] %s1483_s5 }
  0x59   : > { %v245_v15 = vand.u32 2147483647, %v1748_v12  ;;  %v248_v16 = vand.u32 2139095040, %v1748_v12  ;;  %v349_v17 = vand.u32 2147483647, %v1750_v13  ;;  %v352_v18 = vand.u32 2139095040, %v1750_v13  ;;  %p1481_p1 = pnand %p1480_p12, %p2249_p10  ;;  %p1486_p3 = scmp.lt.s32.totalorder %s2151_s23, %s1484_s5 }
  0x5a   : > { %v456_v24 = vand.u32 2139095040, %v1752_v14  ;;  %v453_v33 = vand.u32 2147483647, %v1752_v14  ;;  %vm247_vm12 = vcmp.lt.s32.totalorder %v1748_v12, 0  ;;  %s1485_s13 = scalar_lea.vmem %s1484_s5, 1024 }
  0x5b   : > { %v249_v20 = vshrl.u32 %v248_v16, 23  ;;  %v252_v21 = vand.u32 8388607, %v245_v15  ;;  %v353_v22 = vshrl.u32 %v352_v18, 23  ;;  %v356_v23 = vand.u32 8388607, %v349_v17  ;;  %p1482_p2 = pneg %p1481_p1  ;;  %p1487_p4 = scmp.lt.s32.totalorder %s1485_s13, %s1479_s12 }
  0x5c   : > { %v457_v27 = vshrl.u32 %v456_v24, 23  ;;  %v1775_v43 = vand.u32 8388607, %v453_v33  ;;  %vm1868_vm14 = vcmp.le.f32.partialorder %v245_v15, 0.7853982 }
  0x5d   : > { %v1278_v25 = vadd.s32 4294967169, %v249_v20  ;;  %v1282_v26 = vadd.s32 4294967169, %v353_v22  ;;  %v253_v29 = vor.u32 8388608, %v252_v21  ;;  %v357_v31 = vor.u32 8388608, %v356_v23  ;;  %p1488_p7 = por %p1487_p4, %p1486_p3 }
  0x5e   : > { %v1286_v34 = vadd.s32 4294967169, %v457_v27 }
  0x5f   : > { %v255_v30 = vadd.s32 1, %v1278_v25  ;;  %v359_v32 = vadd.s32 1, %v1282_v26  ;;  %v1769_v39 = vshll.u32 %v253_v29, 8  ;;  %v1771_v42 = vshll.u32 %v357_v31, 8  ;;  %p1489_p8 = pnand %p1488_p7, %p1482_p2 }
  0x60   : > { %v1777_v44 = vadd.s32 1, %v1286_v34 }
  0x61   : > { %vm256_vm0 = vcmp.gt.s32.totalorder %v255_v30, 0  ;;  %vm360_vm1 = vcmp.gt.s32.totalorder %v359_v32, 0 }
  0x62   : > { %v257_v35 = vsel %vm256_vm0, %v255_v30, 0  ;;  %v361_v40 = vsel %vm360_vm1, %v359_v32, 0  ;;  %vm464_vm6 = vcmp.gt.s32.totalorder %v1777_v44, 0 }
  0x63   : > { %v258_v37 = vshrl.u32 %v257_v35, 5  ;;  %v259_v38 = vand.u32 31, %v257_v35  ;;  %v363_v41 = vand.u32 31, %v361_v40  ;;  %v1784_v56 = vshrl.u32 %v361_v40, 5 }
  0x65   : > { %v260_v45 = vsub.s32 32, %v259_v38  ;;  %v262_v47 = vshll.u32 %v1585_v46, %v259_v38  ;;  %v265_v49 = vshll.u32 %v1586_v48, %v259_v38  ;;  %v268_v51 = vshll.u32 %v1587_v50, %v259_v38 }
  0x66   : > { %v271_v53 = vshll.u32 %v1588_v52, %v259_v38  ;;  %v274_v55 = vshll.u32 %v1589_v54, %v259_v38  ;;  %vm277_vm2 = vcmp.lt.s32.totalorder %v258_v37, 1  ;;  %vm278_vm3 = vcmp.lt.s32.totalorder %v258_v37, 2 }
  0x67   : > { %v261_v57 = vshrl.u32 %v1585_v46, %v260_v45  ;;  %v263_v58 = vshrl.u32 %v1586_v48, %v260_v45  ;;  %v266_v59 = vshrl.u32 %v1587_v50, %v260_v45  ;;  %v269_v60 = vshrl.u32 %v1588_v52, %v260_v45 }
  0x68   : > { %v272_v61 = vshrl.u32 %v1589_v54, %v260_v45  ;;  %v275_v63 = vshrl.u32 %v1590_v62, %v260_v45  ;;  %vm280_vm4 = vcmp.lt.s32.totalorder %v258_v37, 4  ;;  %v364_v3 = vsub.s32 32, %v363_v41 }
  0x69   : > { %v264_v0 = vor.u32 %v263_v58, %v262_v47  ;;  %v267_v1 = vor.u32 %v266_v59, %v265_v49  ;;  %v270_v2 = vor.u32 %v269_v60, %v268_v51  ;;  %vm279_vm5 = vcmp.lt.s32.totalorder %v258_v37, 3 }
  0x6a   : > { %v273_v7 = vor.u32 %v272_v61, %v271_v53  ;;  %v276_v8 = vor.u32 %v275_v63, %v274_v55  ;;  %v366_v9 = vshll.u32 %v1585_v46, %v363_v41  ;;  %v369_v23 = vshll.u32 %v1586_v48, %v363_v41 }
  0x6b   : > { %v281_v10 = vsel %vm277_vm2, %v261_v57, %v264_v0  ;;  %v282_v11 = vsel %vm280_vm4, %v270_v2, 2102212464  ;;  %v285_v16 = vsel %vm277_vm2, %v264_v0, %v267_v1  ;;  %v289_v18 = vsel %vm277_vm2, %v267_v1, %v270_v2 }
  0x6c   : > { %v283_v20 = vsel %vm279_vm5, %v267_v1, %v282_v11  ;;  %v286_v21 = vsel %vm280_vm4, %v273_v7, 920167782  ;;  %v290_v22 = vsel %vm280_vm4, %v276_v8, 1326507024  ;;  %v365_v26 = vshrl.u32 %v1585_v46, %v364_v3 }
  0x6d   : > { %v287_v24 = vsel %vm279_vm5, %v270_v2, %v286_v21  ;;  %v291_v25 = vsel %vm279_vm5, %v273_v7, %v290_v22  ;;  %v367_v27 = vshrl.u32 %v1586_v48, %v364_v3  ;;  %v284_v28 = vsel %vm278_vm3, %v281_v10, %v283_v20  ;;  %v1835_v21 = vld [vmem:[#allocation5] sm:$0xf] }
  0x6e   : > { %v288_v29 = vsel %vm278_vm3, %v285_v16, %v287_v24  ;;  %v292_v30 = vsel %vm278_vm3, %v289_v18, %v291_v25  ;;  %v370_v31 = vshrl.u32 %v1587_v50, %v364_v3  ;;  %v372_v47 = vshll.u32 %v1587_v50, %v363_v41 }
  0x6f   : > { %v1805_v32 = vmul.u32.u64.low %v1769_v39, %v292_v30  ;;  %v1806_v34 = vmul.u32.u64.high %v1769_v39, %v292_v30, %v1805_v32  ;;  %v1809_v35 = vmul.u32.u64.low %v1769_v39, %v288_v29  ;;  %v1810_v38 = vmul.u32.u64.high %v1769_v39, %v288_v29, %v1809_v35 }
  0x70   : > { %v368_v40 = vor.u32 %v367_v27, %v366_v9  ;;  %v371_v45 = vor.u32 %v370_v31, %v369_v23  ;;  %v373_v49 = vshrl.u32 %v1588_v52, %v364_v3  ;;  %v375_v37 = vshll.u32 %v1588_v52, %v363_v41 }
  0x71   : > { %v376_v51 = vshrl.u32 %v1589_v54, %v364_v3  ;;  %v378_v53 = vshll.u32 %v1589_v54, %v363_v41  ;;  %v379_v55 = vshrl.u32 %v1590_v62, %v364_v3  ;;  %v300_v57 = vmul.u32 %v1769_v39, %v284_v28 }
  0x72   : > { %v374_v58 = vor.u32 %v373_v49, %v372_v47  ;;  %vm381_vm7 = vcmp.lt.s32.totalorder %v1784_v56, 1  ;;  %vm382_vm8 = vcmp.lt.s32.totalorder %v1784_v56, 2  ;;  %vm302_vm9 = vc.u32 %v1806_v34, %v1809_v35 }
  0x73   : > { %v303_v59 = vadd.s32 1, %v1810_v38  ;;  %v377_v60 = vor.u32 %v376_v51, %v375_v37  ;;  %vm383_vm10 = vcmp.lt.s32.totalorder %v1784_v56, 3  ;;  %v380_v61 = vor.u32 %v379_v55, %v378_v53 }
  0x74   : > { %vm384_vm11 = vcmp.lt.s32.totalorder %v1784_v56, 4  ;;  %v385_v41 = vsel %vm381_vm7, %v365_v26, %v368_v40  ;;  %v389_v63 = vsel %vm381_vm7, %v368_v40, %v371_v45  ;;  %v393_v2 = vsel %vm381_vm7, %v371_v45, %v374_v58 }
  0x75   : > { %v304_v39 = vsel %vm302_vm9, %v303_v59, %v1810_v38  ;;  %v386_v0 = vsel %vm384_vm11, %v374_v58, 2102212464  ;;  %v390_v1 = vsel %vm384_vm11, %v377_v60, 920167782  ;;  %v394_v9 = vsel %vm384_vm11, %v380_v61, 1326507024 }
  0x76   : > { %v305_v3 = vadd.s32 %v304_v39, %v300_v57  ;;  %v387_v7 = vsel %vm383_vm10, %v371_v45, %v386_v0  ;;  %v391_v8 = vsel %vm383_vm10, %v374_v58, %v390_v1  ;;  %v395_v16 = vsel %vm383_vm10, %v377_v60, %v394_v9 }
  0x77   : > { %v388_v10 = vsel %vm382_vm8, %v385_v41, %v387_v7  ;;  %v392_v11 = vsel %vm382_vm8, %v389_v63, %v391_v8  ;;  %v465_v18 = vsel %vm464_vm6, %v1777_v44, 0  ;;  %v396_v22 = vsel %vm382_vm8, %v393_v2, %v395_v16 }
  0x78   : > { %v306_v20 = vadd.s32 536870912, %v305_v3  ;;  %v1840_v23 = vmul.u32.u64.low %v1771_v42, %v392_v11  ;;  %v1841_v24 = vmul.u32.u64.high %v1771_v42, %v392_v11, %v1840_v23  ;;  %v461_v27 = vor.u32 8388608, %v1775_v43 }
  0x79   : > { %v1845_v25 = vmul.u32.u64.low %v1771_v42, %v396_v22  ;;  %v1846_v26 = vmul.u32.u64.high %v1771_v42, %v396_v22, %v1845_v25  ;;  %v557_v28 = vand.u32 2147483647, %v1767_v36  ;;  %v467_v29 = vand.u32 31, %v465_v18 }
  0x7a   : > { %v307_v44 = vshrl.u32 %v306_v20, 30  ;;  %v666_v30 = vrot.slane %v1835_v21, %v1739_v4  ;;  %v404_v56 = vmul.u32 %v1771_v42, %v388_v10  ;;  %v670_v31 = vrot.slane %v1835_v21, %v1741_v5 }
  0x7b   : > { %v407_v38 = vadd.s32 1, %v1841_v24  ;;  %v468_v40 = vsub.s32 32, %v467_v29  ;;  %vm406_vm13 = vc.u32 %v1846_v26, %v1840_v23  ;;  %v1859_v43 = vshll.u32 %v461_v27, 8 }
  0x7c   : > { %v308_v32 = vshll.u32 %v307_v44, 30  ;;  %v560_v45 = vand.u32 2139095040, %v1767_v36  ;;  %v1864_v47 = vand.u32 8388607, %v557_v28  ;;  %v331_v37 = vsub.s32 4, %v307_v44 }
  0x7d   : > { %v408_v51 = vsel %vm406_vm13, %v407_v38, %v1841_v24  ;;  %v1875_v53 = vshrl.u32 %v465_v18, 5  ;;  %v470_v57 = vshll.u32 %v1585_v46, %v467_v29  ;;  %v471_v58 = vshrl.u32 %v1586_v48, %v468_v40 }
  0x7e   : > { %v1872_v49 = vsub.s32 %v305_v3, %v308_v32  ;;  %v409_v55 = vadd.s32 %v408_v51, %v404_v56  ;;  %v473_v59 = vshll.u32 %v1586_v48, %v467_v29  ;;  %v474_v15 = vshrl.u32 %v1587_v50, %v468_v40 }
  0x7f   : > { %v476_v61 = vshll.u32 %v1587_v50, %v467_v29  ;;  %v477_v41 = vshrl.u32 %v1588_v52, %v468_v40  ;;  %v301_v63 = vadd.s32 %v1809_v35, %v1806_v34  ;;  %v479_v0 = vshll.u32 %v1588_v52, %v467_v29 }
  0x80   : > { %v311_v60 = vsub.s32 0, %v1872_v49  ;;  %v410_v39 = vadd.s32 536870912, %v409_v55  ;;  %v561_v1 = vshrl.u32 %v560_v45, 23  ;;  %v332_v3 = vsel %vm247_vm12, %v331_v37, %v307_v44 }
  0x81   : > { %v480_v7 = vshrl.u32 %v1589_v54, %v468_v40  ;;  %vm488_vm15 = vcmp.lt.s32.totalorder %v1875_v53, 4  ;;  %v469_v9 = vshrl.u32 %v1585_v46, %v468_v40  ;;  %v482_v10 = vshll.u32 %v1589_v54, %v467_v29 }
  0x82   : > { %v1279_v2 = vmin.u32 %v311_v60, %v1872_v49  ;;  %v411_v8 = vshrl.u32 %v410_v39, 30  ;;  %v483_v34 = vshrl.u32 %v1590_v62, %v468_v40  ;;  %v472_v11 = vor.u32 %v471_v58, %v470_v57 }
  0x83   : > { %v475_v16 = vor.u32 %v474_v15, %v473_v59  ;;  %v478_v18 = vor.u32 %v477_v41, %v476_v61  ;;  %v481_v22 = vor.u32 %v480_v7, %v479_v0  ;;  %vm485_vm0 = vcmp.lt.s32.totalorder %v1875_v53, 1 }
  0x84   : > { %v313_v35 = vclz %v1279_v2  ;;  %v412_v20 = vshll.u32 %v411_v8, 30  ;;  %vm487_vm1 = vcmp.lt.s32.totalorder %v1875_v53, 3  ;;  %v484_v25 = vor.u32 %v483_v34, %v482_v10 }
  0x85   : > { %v490_v27 = vsel %vm488_vm15, %v478_v18, 2102212464  ;;  %v1290_v44 = vadd.s32 4294967169, %v561_v1  ;;  %v1901_v29 = vsel %vm1868_vm14, 0, %v332_v3  ;;  %vm486_vm2 = vcmp.lt.s32.totalorder %v1875_v53, 2 }
  0x86   : > { %v1280_v24 = vadd.s32 4294967294, %v313_v35  ;;  %v1903_v56 = vsub.s32 %v409_v55, %v412_v20  ;;  %v494_v32 = vsel %vm488_vm15, %v481_v22, 920167782  ;;  %vm351_vm4 = vcmp.lt.s32.totalorder %v1750_v13, 0 }
  0x87   : > { %v489_v38 = vsel %vm485_vm0, %v469_v9, %v472_v11  ;;  %v493_v40 = vsel %vm485_vm0, %v472_v11, %v475_v16  ;;  %v495_v45 = vsel %vm487_vm1, %v478_v18, %v494_v32  ;;  %v491_v55 = vsel %vm487_vm1, %v475_v16, %v490_v27 }
  0x88   : > { %vm1281_vm3 = vcmp.lt.s32.totalorder %v1280_v24, 0  ;;  %v415_v51 = vsub.s32 0, %v1903_v56  ;;  %v497_v57 = vsel %vm485_vm0, %v475_v16, %v478_v18  ;;  %v498_v15 = vsel %vm488_vm15, %v484_v25, 1326507024 }
  0x89   : > { %v316_v37 = vsel %vm1281_vm3, 0, %v1280_v24  ;;  %vm1925_vm5 = vcmp.le.f32.partialorder %v349_v17, 0.7853982  ;;  %v496_v39 = vsel %vm486_vm2, %v493_v40, %v495_v45  ;;  %v499_v0 = vsel %vm487_vm1, %v481_v22, %v498_v15 }
  0x8a   : > { %v317_v58 = vsub.s32 32, %v316_v37  ;;  %v318_v59 = vshll.u32 %v1872_v49, %v316_v37  ;;  %v321_v60 = vsub.s32 4294967266, %v316_v37  ;;  %v1283_v41 = vmin.u32 %v415_v51, %v1903_v56 }
  0x8b   : > { %v565_v49 = vor.u32 8388608, %v1864_v47  ;;  %v500_v3 = vsel %vm486_vm2, %v497_v57, %v499_v0  ;;  %v567_v7 = vadd.s32 1, %v1290_v44  ;;  %v338_v17 = vadd.s32 3, %v1901_v29 }
  0x8c   : > { %v319_v1 = vshrl.u32 %v301_v63, %v317_v58  ;;  %v322_v2 = vadd.s32 127, %v321_v60  ;;  %v417_v9 = vclz %v1283_v41  ;;  %v435_v10 = vsub.s32 4, %v411_v8 }
  0x8d   : > { %v492_v34 = vsel %vm486_vm2, %v489_v38, %v491_v55  ;;  %v1941_v16 = vmul.u32.u64.low %v1859_v43, %v500_v3  ;;  %v1942_v18 = vmul.u32.u64.high %v1859_v43, %v500_v3, %v1941_v16  ;;  %vm568_vm6 = vcmp.gt.s32.totalorder %v567_v7, 0 }
  0x8e   : > { %v320_v35 = vor.u32 %v319_v1, %v318_v59  ;;  %v323_v11 = vshll.u32 %v322_v2, 23  ;;  %v1284_v20 = vadd.s32 4294967294, %v417_v9  ;;  %v405_v27 = vadd.s32 %v1840_v23, %v1846_v26 }
  0x8f   : > { %v1945_v63 = vmul.u32.u64.low %v1859_v43, %v496_v39  ;;  %v1946_v22 = vmul.u32.u64.high %v1859_v43, %v496_v39, %v1945_v63  ;;  %v569_v53 = vsel %vm568_vm6, %v567_v7, 0  ;;  %v1951_v44 = vand.u32 3, %v338_v17 }
  0x90   : > { %v324_v24 = vor.u32 4788187, %v323_v11  ;;  %v327_v25 = vcvt.s32.f32 %v320_v35  ;;  %vm1285_vm7 = vcmp.lt.s32.totalorder %v1284_v20, 0  ;;  %v436_v32 = vsel %vm351_vm4, %v435_v10, %v411_v8 }
  0x91   : > { %v571_v38 = vand.u32 31, %v569_v53  ;;  %v420_v45 = vsel %vm1285_vm7, 0, %v1284_v20  ;;  %v508_v37 = vmul.u32 %v1859_v43, %v492_v34  ;;  %vm510_vm8 = vc.u32 %v1942_v18, %v1945_v63 }
  0x92   : > { %v325_v40 = vand.u32 2147483647, %v324_v24  ;;  %v421_v51 = vsub.s32 32, %v420_v45  ;;  %v422_v55 = vshll.u32 %v1903_v56, %v420_v45  ;;  %v425_v57 = vsub.s32 4294967266, %v420_v45 }
  0x93   : > { %v511_v23 = vadd.s32 1, %v1946_v22  ;;  %v1962_v58 = vsel %vm1925_vm5, 0, %v436_v32  ;;  %v1964_v8 = vshrl.u32 %v569_v53, 5  ;;  %v572_v59 = vsub.s32 32, %v571_v38 }
  0x94   : > { %v328_v26 = vmul.f32 %v327_v25, %v325_v40  ;;  %v423_v60 = vshrl.u32 %v405_v27, %v421_v51  ;;  %v426_v15 = vadd.s32 127, %v425_v57  ;;  %v574_v41 = vshll.u32 %v1585_v46, %v571_v38 }
  0x95   : > { %v512_v43 = vsel %vm510_vm8, %v511_v23, %v1946_v22  ;;  %v575_v56 = vshrl.u32 %v1586_v48, %v572_v59  ;;  %v577_v1 = vshll.u32 %v1586_v48, %v571_v38  ;;  %v578_v7 = vshrl.u32 %v1587_v50, %v572_v59 }
  0x96   : > { %v329_v39 = vxor.u32 2147483648, %v328_v26  ;;  %v513_v0 = vadd.s32 %v512_v43, %v508_v37  ;;  %v424_v2 = vor.u32 %v423_v60, %v422_v55  ;;  %v427_v3 = vshll.u32 %v426_v15, 23 }
  0x97   : > { %v580_v17 = vshll.u32 %v1587_v50, %v571_v38  ;;  %v581_v34 = vshrl.u32 %v1588_v52, %v572_v59  ;;  %v583_v35 = vshll.u32 %v1588_v52, %v571_v38  ;;  %v576_v20 = vor.u32 %v575_v56, %v574_v41 }
  0x98   : > { %v330_v9 = vsel %vm247_vm12, %v329_v39, %v328_v26  ;;  %v514_v10 = vadd.s32 536870912, %v513_v0  ;;  %v428_v16 = vor.u32 4788187, %v427_v3  ;;  %v431_v48 = vcvt.s32.f32 %v424_v2 }
  0x99   : > { %v333_v11 = vsel %vm1868_vm14, %v1748_v12, %v330_v9  ;;  %v579_v24 = vor.u32 %v578_v7, %v577_v1  ;;  %v584_v50 = vshrl.u32 %v1589_v54, %v572_v59  ;;  %v586_v27 = vshll.u32 %v1589_v54, %v571_v38 }
  0x9a   : > { %1407 = vcosq.f32 %v333_v11  ;;  %v1979_v22 = vshrl.u32 %v514_v10, 30  ;;  %v429_v25 = vand.u32 2147483647, %v428_v16  ;;  %v587_v53 = vshrl.u32 %v1590_v62, %v572_v59 }
  0x9b   : > { %1409 = vsinq.f32 %v333_v11  ;;  %v442_v52 = vadd.s32 3, %v1962_v58  ;;  %v585_v32 = vor.u32 %v584_v50, %v583_v35  ;;  %vm589_vm9 = vcmp.lt.s32.totalorder %v1964_v8, 1  ;;  %v2061_v50 = vld [vmem:[%s2230_s2] sm:$0xf] }
  0x9c   : > { %v516_v42 = vshll.u32 %v1979_v22, 30  ;;  %v432_v40 = vmul.f32 %v431_v48, %v429_v25  ;;  %v573_v45 = vshrl.u32 %v1585_v46, %v572_v59  ;;  %v582_v37 = vor.u32 %v581_v34, %v580_v17 }
  0x9d   : > { %v1990_v51 = vshll.u32 %v565_v49, 8  ;;  %v588_v54 = vor.u32 %v587_v53, %v586_v27  ;;  %vm591_vm10 = vcmp.lt.s32.totalorder %v1964_v8, 3  ;;  %vm592_vm11 = vcmp.lt.s32.totalorder %v1964_v8, 4 }
  0x9e   : > { %v1992_v55 = vsub.s32 %v513_v0, %v516_v42  ;;  %vm337_vm12 = vweird.f32 %v1748_v12  ;;  %v433_v62 = vxor.u32 2147483648, %v432_v40  ;;  %vm590_vm13 = vcmp.lt.s32.totalorder %v1964_v8, 2 }
  0x9f   : > { %v594_v46 = vsel %vm592_vm11, %v582_v37, 2102212464  ;;  %v597_v47 = vsel %vm589_vm9, %v576_v20, %v579_v24  ;;  %vm340_vm14 = vcmp.lt.s32.totalorder %v1951_v44, 2  ;;  %v2003_v49 = vand.u32 3, %v442_v52 }
  0xa0   : > { %v519_v38 = vsub.s32 0, %v1992_v55  ;;  %v598_v57 = vsel %vm592_vm11, %v585_v32, 920167782  ;;  %v434_v23 = vsel %vm351_vm4, %v433_v62, %v432_v40  ;;  %v593_v26 = vsel %vm589_vm9, %v573_v45, %v576_v20 }
  0xa1   : > { %v595_v59 = vsel %vm591_vm10, %v579_v24, %v594_v46  ;;  %v599_v60 = vsel %vm591_vm10, %v582_v37, %v598_v57  ;;  %v437_v15 = vsel %vm1925_vm5, %v1750_v13, %v434_v23  ;;  %v601_v39 = vsel %vm589_vm9, %v579_v24, %v582_v37 }
  0xa2   : > { %v1287_v43 = vmin.u32 %v519_v38, %v1992_v55  ;;  %v600_v41 = vsel %vm590_vm13, %v597_v47, %v599_v60  ;;  %1411 = vcosq.f32 %v437_v15  ;;  %v602_v0 = vsel %vm592_vm11, %v588_v54, 1326507024 }
  0xa3   : > { %v2027_v56 = vmul.u32.u64.low %v1990_v51, %v600_v41  ;;  %v2028_v1 = vmul.u32.u64.high %v1990_v51, %v600_v41, %v2027_v56  ;;  %vm341_vm15 = vcmp.eq.s32.totalorder %v1951_v44, 0  ;;  %vm344_vm0 = vcmp.eq.s32.totalorder %v1951_v44, 2 }
  0xa4   : > { %v1408_v2 = vpop.eup %1407  ;;  %1413 = vsinq.f32 %v437_v15  ;;  %v521_v61 = vclz %v1287_v43  ;;  %vm448_vm1 = vcmp.eq.s32.totalorder %v2003_v49, 2  ;;  %v509_v17 = vadd.s32 %v1945_v63, %v1942_v18 }
  0xa5   : > { %v1410_v3 = vpop.eup %1409  ;;  %v345_v7 = vxor.u32 2147483648, %v1408_v2  ;;  %v603_v9 = vsel %vm591_vm10, %v585_v32, %v602_v0  ;;  %vm445_vm2 = vcmp.eq.s32.totalorder %v2003_v49, 0  ;;  %v596_v35 = vsel %vm590_vm13, %v593_v26, %v595_v59 }
  0xa6   : > { %v342_v10 = vxor.u32 2147483648, %v1410_v3  ;;  %v1288_v34 = vadd.s32 4294967294, %v521_v61  ;;  %v604_v11 = vsel %vm590_vm13, %v601_v39, %v603_v9  ;;  %vm444_vm3 = vcmp.lt.s32.totalorder %v2003_v49, 2 }
  0xa7   : > { %v346_v16 = vsel %vm344_vm0, %v345_v7, %v1410_v3  ;;  %v539_v48 = vsub.s32 4, %v1979_v22  ;;  %v2050_v18 = vmul.u32.u64.low %v1990_v51, %v604_v11  ;;  %v2051_v63 = vmul.u32.u64.high %v1990_v51, %v604_v11, %v2050_v18 }
  0xa8   : > { %v343_v20 = vsel %vm341_vm15, %v1408_v2, %v342_v10  ;;  %vm441_vm4 = vweird.f32 %v1750_v13  ;;  %vm1289_vm5 = vcmp.lt.s32.totalorder %v1288_v34, 0  ;;  %v615_v24 = vadd.s32 1, %v2028_v1 }
  0xa9   : > { %v784_v8 = vand.u32 3, %v1901_v29  ;;  %v347_v25 = vsel %vm340_vm14, %v343_v20, %v346_v16  ;;  %v524_v27 = vsel %vm1289_vm5, 0, %v1288_v34  ;;  %v612_v53 = vmul.u32 %v1990_v51, %v596_v35 }
  0xaa   : > { %v887_v52 = vand.u32 3, %v1962_v58  ;;  %v348_v42 = vsel %vm337_vm12, nan, %v347_v25  ;;  %v525_v32 = vsub.s32 32, %v524_v27  ;;  %v526_v29 = vshll.u32 %v1992_v55, %v524_v27 }
  0xab   : > { %v529_v40 = vsub.s32 4294967266, %v524_v27  ;;  %v683_v45 = vadd.f32 %v666_v30, %v348_v42  ;;  %vm614_vm6 = vc.u32 %v2051_v63, %v2027_v56  ;;  %vm785_vm7 = vcmp.lt.s32.totalorder %v784_v8, 2 }
  0xac   : > { %v1108_v44 = vrot.slane %v2061_v50, %v1739_v4  ;;  %v527_v37 = vshrl.u32 %v509_v17, %v525_v32  ;;  %v616_v51 = vsel %vm614_vm6, %v615_v24, %v2028_v1  ;;  %vm786_vm8 = vcmp.eq.s32.totalorder %v784_v8, 0  ;;  %v1412_v54 = vpop.eup %1411 }
  0xad   : > { %v530_v58 = vadd.s32 127, %v529_v40  ;;  %687 = vst [vmem:[%s2080_s20] sm:$0xff] %v683_v45  ;;  %v617_v55 = vadd.s32 %v616_v51, %v612_v53  ;;  %v788_v30 = vsel %vm786_vm8, %v1408_v2, %v342_v10  ;;  %vm789_vm9 = vcmp.eq.s32.totalorder %v784_v8, 2 }
  0xae   : > { %vm888_vm10 = vcmp.lt.s32.totalorder %v887_v52, 2  ;;  %v1414_v62 = vpop.eup %1413  ;;  %v449_v46 = vxor.u32 2147483648, %v1412_v54  ;;  %v528_v47 = vor.u32 %v527_v37, %v526_v29  ;;  %v791_v4 = vsel %vm789_vm9, %v345_v7, %v1410_v3 }
  0xaf   : > { %v531_v38 = vshll.u32 %v530_v58, 23  ;;  %v446_v57 = vxor.u32 2147483648, %v1414_v62  ;;  %v618_v23 = vadd.s32 536870912, %v617_v55  ;;  %v792_v26 = vsel %vm785_vm7, %v788_v30, %v791_v4 }
  0xb0   : > { %vm889_vm11 = vcmp.eq.s32.totalorder %v887_v52, 0  ;;  %v450_v59 = vsel %vm448_vm1, %v449_v46, %v1414_v62  ;;  %v535_v15 = vcvt.s32.f32 %v528_v47  ;;  %v793_v43 = vsel %vm337_vm12, nan, %v792_v26 }
  0xb1   : > { %v532_v60 = vor.u32 4788187, %v531_v38  ;;  %v447_v41 = vsel %vm445_vm2, %v1412_v54, %v446_v57  ;;  %v2090_v39 = vshrl.u32 %v618_v23, 30  ;;  %v1125_v0 = vadd.f32 %v1108_v44, %v793_v43 }
  0xb2   : > { %v891_v1 = vsel %vm889_vm11, %v1412_v54, %v446_v57  ;;  %v451_v2 = vsel %vm444_vm3, %v447_v41, %v450_v59  ;;  %vm892_vm13 = vcmp.eq.s32.totalorder %v887_v52, 2  ;;  %v1112_v3 = vrot.slane %v2061_v50, %v1741_v5 }
  0xb3   : > { %v533_v61 = vand.u32 2147483647, %v532_v60  ;;  %v452_v12 = vsel %vm441_vm4, nan, %v451_v2  ;;  %v620_v7 = vshll.u32 %v2090_v39, 30  ;;  %1129 = vst [vmem:[%s2101_s22] sm:$0xff] %v1125_v0  ;;  %v894_v17 = vsel %vm892_vm13, %v449_v46, %v1414_v62 }
  0xb4   : > { %v684_v49 = vadd.f32 %v670_v31, %v452_v12  ;;  %v895_v10 = vsel %vm888_vm10, %v891_v1, %v894_v17  ;;  %vm455_vm12 = vcmp.lt.s32.totalorder %v1752_v14, 0  ;;  %vm454_vm14 = vcmp.le.f32.partialorder %v453_v33, 0.7853982 }
  0xb5   : > { %v536_v9 = vmul.f32 %v535_v15, %v533_v61  ;;  %v621_v34 = vsub.s32 %v617_v55, %v620_v7  ;;  %v896_v35 = vsel %vm441_vm4, nan, %v895_v10  ;;  %v540_v16 = vsel %vm455_vm12, %v539_v48, %v1979_v22 }
  0xb6   : > { %688 = vst [vmem:[%s2080_s20 + $0x8] sm:$0xff] %v684_v49  ;;  %v1126_v5 = vadd.f32 %v1112_v3, %v896_v35  ;;  %v542_v24 = vsel %vm454_vm14, 0, %v540_v16  ;;  %v613_v33 = vadd.s32 %v2027_v56, %v2051_v63  ;;  %v674_v29 = vrot.slane %v1835_v21, %v1743_v6 }
  0xb7   : > { %v537_v11 = vxor.u32 2147483648, %v536_v9  ;;  %v623_v31 = vsub.s32 0, %v621_v34  ;;  %v546_v25 = vadd.s32 3, %v542_v24  ;;  %v990_v22 = vand.u32 3, %v542_v24 }
  0xb8   : > { %1130 = vst [vmem:[%s2101_s22 + $0x8] sm:$0xff] %v1126_v5  ;;  %vm545_vm0 = vweird.f32 %v1752_v14  ;;  %v1116_v54 = vrot.slane %v2061_v50, %v1743_v6  ;;  %v643_v23 = vsub.s32 4, %v2090_v39  ;;  %vm559_vm7 = vcmp.lt.s32.totalorder %v1767_v36, 0 }
  0xb9   : > { %v538_v18 = vsel %vm455_vm12, %v537_v11, %v536_v9  ;;  %v1291_v8 = vmin.u32 %v623_v31, %v621_v34  ;;  %v547_v53 = vand.u32 3, %v546_v25  ;;  %vm995_vm3 = vcmp.eq.s32.totalorder %v990_v22, 2 }
  0xba   : > { %v541_v20 = vsel %vm454_vm14, %v1752_v14, %v538_v18  ;;  %vm992_vm4 = vcmp.eq.s32.totalorder %v990_v22, 0  ;;  %vm991_vm6 = vcmp.lt.s32.totalorder %v990_v22, 2  ;;  %vm558_vm8 = vcmp.le.f32.partialorder %v557_v28, 0.7853982 }
  0xbb   : > { %1415 = vcosq.f32 %v541_v20  ;;  %v625_v13 = vclz %v1291_v8  ;;  %vm549_vm1 = vcmp.eq.s32.totalorder %v547_v53, 0  ;;  %vm552_vm2 = vcmp.eq.s32.totalorder %v547_v53, 2 }
  0xbc   : > { %1417 = vsinq.f32 %v541_v20  ;;  %vm548_vm5 = vcmp.lt.s32.totalorder %v547_v53, 2  ;;  %v644_v0 = vsel %vm559_vm7, %v643_v23, %v2090_v39  ;;  %vm649_vm12 = vweird.f32 %v1767_v36 }
  0xbd   : > { %v1292_v27 = vadd.s32 4294967294, %v625_v13  ;;  %v646_v61 = vsel %vm558_vm8, 0, %v644_v0  ;;  %v678_v9 = vrot.slane %v1835_v21, %v1758_v19 }
  0xbe   : > { %v650_v14 = vadd.s32 3, %v646_v61  ;;  %v1093_v12 = vand.u32 3, %v646_v61 }
  0xbf   : > { %vm1293_vm15 = vcmp.lt.s32.totalorder %v1292_v27, 0 }
  0xc0   : > { %v628_v52 = vsel %vm1293_vm15, 0, %v1292_v27  ;;  %v651_v3 = vand.u32 3, %v650_v14  ;;  %vm1098_vm10 = vcmp.eq.s32.totalorder %v1093_v12, 2  ;;  %vm1095_vm13 = vcmp.eq.s32.totalorder %v1093_v12, 0 }
  0xc1   : > { %v629_v48 = vsub.s32 32, %v628_v52  ;;  %v630_v42 = vshll.u32 %v621_v34, %v628_v52  ;;  %v633_v32 = vsub.s32 4294967266, %v628_v52  ;;  %vm1094_vm15 = vcmp.lt.s32.totalorder %v1093_v12, 2 }
  0xc2   : > { %vm656_vm9 = vcmp.eq.s32.totalorder %v651_v3, 2  ;;  %vm653_vm11 = vcmp.eq.s32.totalorder %v651_v3, 0  ;;  %vm652_vm14 = vcmp.lt.s32.totalorder %v651_v3, 2  ;;  %v1120_v34 = vrot.slane %v2061_v50, %v1758_v19 }
  0xc3   : > { %v631_v40 = vshrl.u32 %v613_v33, %v629_v48  ;;  %v634_v45 = vadd.s32 127, %v633_v32 }
  0xc5   : > { %v1416_v44 = vpop.eup %1415  ;;  %v632_v63 = vor.u32 %v631_v40, %v630_v42  ;;  %v635_v58 = vshll.u32 %v634_v45, 23 }
  0xc6   : > { %v1418_v37 = vpop.eup %1417  ;;  %v553_v56 = vxor.u32 2147483648, %v1416_v44 }
  0xc7   : > { %v550_v51 = vxor.u32 2147483648, %v1418_v37  ;;  %v636_v30 = vor.u32 4788187, %v635_v58  ;;  %v639_v62 = vcvt.s32.f32 %v632_v63 }
  0xc8   : > { %v554_v55 = vsel %vm552_vm2, %v553_v56, %v1418_v37  ;;  %v997_v46 = vsel %vm995_vm3, %v553_v56, %v1418_v37 }
  0xc9   : > { %v551_v47 = vsel %vm549_vm1, %v1416_v44, %v550_v51  ;;  %v994_v38 = vsel %vm992_vm4, %v1416_v44, %v550_v51  ;;  %v637_v57 = vand.u32 2147483647, %v636_v30 }
  0xca   : > { %v555_v4 = vsel %vm548_vm5, %v551_v47, %v554_v55  ;;  %v998_v26 = vsel %vm991_vm6, %v994_v38, %v997_v46 }
  0xcb   : > { %v556_v59 = vsel %vm545_vm0, nan, %v555_v4  ;;  %v999_v6 = vsel %vm545_vm0, nan, %v998_v26  ;;  %v640_v15 = vmul.f32 %v639_v62, %v637_v57 }
  0xcc   : > { %v685_v60 = vadd.f32 %v674_v29, %v556_v59  ;;  %v1127_v43 = vadd.f32 %v1116_v54, %v999_v6 }
  0xcd   : > { %v641_v41 = vxor.u32 2147483648, %v640_v15 }
  0xce   : > { %689 = vst [vmem:[%s2080_s20 + $0x10] sm:$0xff] %v685_v60  ;;  %1131 = vst [vmem:[%s2101_s22 + $0x10] sm:$0xff] %v1127_v43 }
  0xcf   : > { %v642_v1 = vsel %vm559_vm7, %v641_v41, %v640_v15 }
  0xd0   : > { %v645_v2 = vsel %vm558_vm8, %v1767_v36, %v642_v1 }
  0xd1   : > { %1419 = vcosq.f32 %v645_v2 }
  0xd2   : > { %1421 = vsinq.f32 %v645_v2 }
  0xdb   : > { %v1420_v7 = vpop.eup %1419 }
  0xdc   : > { %v1422_v17 = vpop.eup %1421  ;;  %v657_v28 = vxor.u32 2147483648, %v1420_v7 }
  0xdd   : > { %v654_v39 = vxor.u32 2147483648, %v1422_v17 }
  0xde   : > { %v658_v49 = vsel %vm656_vm9, %v657_v28, %v1422_v17  ;;  %v1100_v10 = vsel %vm1098_vm10, %v657_v28, %v1422_v17 }
  0xdf   : > { %v655_v35 = vsel %vm653_vm11, %v1420_v7, %v654_v39  ;;  %v1097_v11 = vsel %vm1095_vm13, %v1420_v7, %v654_v39 }
  0xe0   : > { %v659_v16 = vsel %vm652_vm14, %v655_v35, %v658_v49  ;;  %v1101_v5 = vsel %vm1094_vm15, %v1097_v11, %v1100_v10 }
  0xe1   : > { %v660_v31 = vsel %vm649_vm12, nan, %v659_v16  ;;  %v1102_v21 = vsel %vm649_vm12, nan, %v1101_v5 }
  0xe2   : > { %v686_v19 = vadd.f32 %v678_v9, %v660_v31  ;;  %v1128_v50 = vadd.f32 %v1120_v34, %v1102_v21 }
  0xe4   : > { %690 = vst [vmem:[%s2080_s20 + $0x18] sm:$0xff] %v686_v19  ;;  %1132 = vst [vmem:[%s2101_s22 + $0x18] sm:$0xff] %v1128_v50 }
  0xe5   : > { %1492 = shalt.err (!%p1489_p8)
}
  0xe6   : > { %s1493_s14 = scalar_lea.hbm %s2156_s19, 512  ;;  %s1497_s28 = scalar_lea.hbm %s2231_s3, 1024 }
  0xe7   : > { %p1494_p11 = scmp.ne.s32.totalorder %s2156_s19, %s1493_s14  ;;  %p1498_p0 = scmp.lt.u32.totalorder %s2156_s19, %s2231_s3 }
  0xe8   : > { %p1499_p5 = scmp.lt.u32.totalorder %s1497_s28, %s1493_s14  ;;  %p1501_p12 = scmp.lt.u32.totalorder %s1493_s14, %s2156_s19 }
  0xe9   : > { %p1495_p13 = pnand %p1494_p11, %p2249_p10 }
  0xea   : > { %p1500_p9 = por %p1499_p5, %p1498_p0 }
  0xeb   : > { %p1496_p6 = pneg %p1495_p13 }
  0xec   : > { %p1502_p1 = por %p1501_p12, %p1500_p9 }
  0xee   : > { %p1503_p2 = pnand %p1502_p1, %p1496_p6 }
  0xf0   : > { %1506 = shalt.err (!%p1503_p2)
}
  0xf1   : > { %1344 = dma.vmem_to_hbm [thread:$0]  (%p2249_p10), %s2151_s23, 512, %s2156_s19, %s1134_s11  }
  0xf2   : > { %s1139_s9 = scalar_lea.sflag [#allocation9], %s2032_s27  ;;  %s1507_s10 = scalar_lea.vmem %s2158_s30, 512 }
  0xf3   : > { %p1508_p3 = scmp.ne.s32.totalorder %s2158_s30, %s1507_s10  ;;  %s1592_s12 = smov [#allocation8]  }
  0xf4   : > { %s1511_s6 = sshll.u32 %s1592_s12, 4  ;;  %s1512_s6 = int_to_ptr.vmem [resolvable:$false] %s1511_s6 }
  0xf5   : > { %p1509_p4 = pnand %p1508_p3, %p2249_p10  ;;  %s1513_s5 = scalar_lea.vmem %s1512_s6, 1024 }
  0xf6   : > { %p1514_p8 = scmp.lt.s32.totalorder %s2158_s30, %s1512_s6  ;;  %p1515_p11 = scmp.lt.s32.totalorder %s1513_s5, %s1507_s10 }
  0xf7   : > { %p1510_p7 = pneg %p1509_p4 }
  0xf8   : > { %p1516_p13 = por %p1515_p11, %p1514_p8 }
  0xfa   : > { %p1517_p6 = pnand %p1516_p13, %p1510_p7 }
  0xfc   : > { %1520 = shalt.err (!%p1517_p6)
}
  0xfd   : > { %s1521_s27 = scalar_lea.hbm %s2163_s29, 512  ;;  %s1525_s11 = scalar_lea.hbm %s2232_s4, 1024 }
  0xfe   : > { %p1522_p0 = scmp.ne.s32.totalorder %s2163_s29, %s1521_s27  ;;  %p1526_p12 = scmp.lt.u32.totalorder %s2163_s29, %s2232_s4 }
  0xff   : > { %p1527_p1 = scmp.lt.u32.totalorder %s1525_s11, %s1521_s27  ;;  %p1529_p3 = scmp.lt.u32.totalorder %s1521_s27, %s2163_s29 }
 0x100   : > { %p1523_p5 = pnand %p1522_p0, %p2249_p10 }
 0x101   : > { %p1528_p2 = por %p1527_p1, %p1526_p12 }
 0x102   : > { %p1524_p9 = pneg %p1523_p5 }
 0x103   : > { %p1530_p4 = por %p1529_p3, %p1528_p2 }
 0x105   : > { %p1531_p7 = pnand %p1530_p4, %p1524_p9 }
 0x107   : > { %1534 = shalt.err (!%p1531_p7)
}
 0x108   : > { %1345 = dma.vmem_to_hbm [thread:$0]  (%p2249_p10), %s2158_s30, 512, %s2163_s29, %s1139_s9  }
 0x109 PF: > { %p1366_p8 = scmp.ge.s32.totalorder %s1581_s18, 2  ;;  %s1179_s20 = sand.u32 1, %s1569_s15  }
 0x10a   : > { %p2250_p11 = scmp.ne.s32.totalorder %s2237_s26, 0  ;;  %s1180_s22 = scalar_lea.sflag [#allocation4], %s1179_s20 }
 0x10c   : > { %p1356_p13 = pnand %p1366_p8, %p2250_p11 }
 0x10e   : > { %1560 = dma.done.wait (!%p1356_p13), %s1180_s22, 512  }
 0x10f   : > { %1562 = vsyncadd (!%p1356_p13), %s1180_s22, 4294966784  ;;  %s1189_s28 = scalar_lea.sflag [#allocation9], %s1179_s20 }
 0x110   : > { %1564 = dma.done.wait (!%p1356_p13), %s1189_s28, 512  }
 0x111   : > { %1566 = vsyncadd (!%p1356_p13), %s1189_s28, 4294966784  ;;  %p20_p10 = scmp.ge.s32.totalorder %s1643_s21, 4   ;;  %s2251_s15 = smov %s1573_s16 }
 0x112   : > { %s2252_s16 = smov %s1577_s17  ;;  %s2253_s17 = smov %s1654_s24 }
 0x113   : > { %s2254_s18 = smov %s1643_s21  ;;  %22 = sbr.rel (!%p20_p10) target bundleno = 7 (0x7), region = 90 }
 0x11a   :  { %1194 = vsyncpa [#allocation3], 1 }
 0x11b   :  { %1196 = vsyncpa [#allocation3 + $0x1], 1 }
 0x11c   :  { %1197 = vsyncpa [#allocation6], 1 }
 0x11d   :  { %1198 = vsyncpa [#allocation4], 1 }
 0x11e   :  { %1200 = vsyncpa [#allocation4 + $0x1], 1 }
 0x11f   :  { %1201 = vsyncpa [#allocation9], 1 }
 0x120   :  { %1203 = vsyncpa [#allocation9 + $0x1], 1 }

</bundles_post_ra>
